<compile_context>
chip_gen: v5e
topology: v5e:2x2
jax: 0.10.0
libtpu: 0.0.40
codegen_flags: <defaults>
</compile_context>

<pallas_src>
import jax
import jax.numpy as jnp
from jax.experimental import pallas as pl
from jax.experimental.pallas import tpu as pltpu


def _concat_add_kernel(e1, e2, e3, e4, d1, d2, d3, d4, o_ref):
    # Input blocks: (R, L); output block: (4, R, L).  Each store is a full
    # (8k, 128m)-aligned slab -> unmasked vst, full vreg occupancy.
    o_ref[0, :, :] = e1[...] + d1[...]
    o_ref[1, :, :] = e2[...] + d2[...]
    o_ref[2, :, :] = e3[...] + d3[...]
    o_ref[3, :, :] = e4[...] + d4[...]


def _vmem_capacity_bytes() -> int:
    try:
        info = pltpu.get_tpu_info()
        return int(getattr(info, "vmem_capacity_bytes", 64 * 1024 * 1024))
    except Exception:  # interpret mode / unknown chip: assume smallest (v7x)
        return 64 * 1024 * 1024


def _pick_lane(chw: int) -> int:
    """Lane dim L (multiple of 128). Prefer a wide L but keep >= 8 rows so the
    sublane dim of each block can be a full multiple of 8."""
    for lane in (512, 256, 128):
        if chw % lane == 0 and chw // lane >= 8:
            return lane
    return 128  # chw < 1024 or not a multiple of 128 (wrapper pads in that case)


def _pick_row_tile(n_batch: int, rows: int, lane: int, itemsize: int,
                   vmem_budget_bytes: int) -> int:
    """Rows per block R. Double-buffered working set is exactly
    2 * (8 inputs + 4 output planes) * R * lane * itemsize = 24*R*lane*itemsize."""
    if rows <= 8:
        return rows                       # block spans the full (small) row dim
    per_row = 24 * lane * itemsize
    max_r = max(8, (vmem_budget_bytes // per_row) // 8 * 8)
    r = max(8, (min(max_r, rows) // 8) * 8)
    # Keep enough grid steps to feed both v7x TensorCores / give the pipeline
    # a steady state; no-op on single-TC v5e/v6e.
    target_steps = 8
    while r > 8 and n_batch * pl.cdiv(rows, r) < target_steps:
        r = max(8, (r // 2) // 8 * 8)
    return r


def concat_forward(e1, e2, e3, e4, d1, d2, d3, d4):
    N, C, H, W = e1.shape
    for x in (e2, e3, e4, d1, d2, d3, d4):
        assert x.shape == (N, C, H, W), "all inputs must share shape"
        assert x.dtype == e1.dtype, "all inputs must share dtype"

    chw = C * H * W
    itemsize = jnp.dtype(e1.dtype).itemsize

    vmem_cap = _vmem_capacity_bytes()
    vmem_budget = min(16 * 1024 * 1024, vmem_cap // 4)   # double-buffered set

    lane = _pick_lane(chw)
    chw_pad = pl.cdiv(chw, lane) * lane        # pad flattened axis if ragged
    rows = chw_pad // lane
    r_tile = _pick_row_tile(N, rows, lane, itemsize, vmem_budget)
    num_row_tiles = pl.cdiv(rows, r_tile)      # ragged last row-block is OK

    def to_rows(x):
        x = x.reshape(N, chw)
        if chw_pad != chw:
            x = jnp.pad(x, ((0, 0), (0, chw_pad - chw)))
        return x.reshape(N, rows, lane)

    flat = [to_rows(x) for x in (e1, e2, e3, e4, d1, d2, d3, d4)]

    in_spec = pl.BlockSpec((None, r_tile, lane), lambda n, t: (n, t, 0))
    out_spec = pl.BlockSpec((None, 4, r_tile, lane), lambda n, t: (n, 0, t, 0))

    # Exact footprint (blocks are (8,128)-aligned, so no hidden padding).
    needed = 24 * r_tile * lane * itemsize
    vmem_limit = int(min(max(needed + (8 << 20), 32 << 20),
                         max(vmem_cap // 2, 32 << 20)))

    cost = pl.CostEstimate(
        flops=4 * N * chw,                        # four elementwise adds
        transcendentals=0,
        bytes_accessed=12 * N * chw * itemsize,   # 8 reads + 4 writes / element
    )

    out_flat = pl.pallas_call(
        _concat_add_kernel,
        out_shape=jax.ShapeDtypeStruct((N, 4, rows, lane), e1.dtype),
        grid_spec=pltpu.PrefetchScalarGridSpec(
            num_scalar_prefetch=0,
            grid=(N, num_row_tiles),
            in_specs=[in_spec] * 8,
            out_specs=out_spec,
        ),
        compiler_params=pltpu.CompilerParams(
            dimension_semantics=("parallel", "parallel"),
            vmem_limit_bytes=vmem_limit,
        ),
        cost_estimate=cost,
    )(*flat)

    out = out_flat.reshape(N, 4, chw_pad)
    if chw_pad != chw:
        out = out[:, :, :chw]
    # (N, 4, C*H*W) -> (N, 4*C, H, W) == channel-concat of the four sums.
    return out.reshape(N, 4 * C, H, W)


if __name__ == "__main__":
    key = jax.random.PRNGKey(0)
    N, C, H, W = 2, 4, 16, 16
    keys = jax.random.split(key, 8)
    e1, e2, e3, e4, d1, d2, d3, d4 = [
        jax.random.normal(k, (N, C, H, W), dtype=jnp.float32) for k in keys
    ]

    out = concat_forward(e1, e2, e3, e4, d1, d2, d3, d4)
    out = jax.block_until_ready(out)

    # Reference check (plain JAX) for correctness.
    ref = jnp.concatenate([e1 + d1, e2 + d2, e3 + d3, e4 + d4], axis=1)
    assert out.shape == (N, 4 * C, H, W)
    assert jnp.allclose(out, ref, atol=1e-6), "mismatch vs reference"

    print("KERNEL_OK")
</pallas_src>

<mosaic_0001>
module attributes {stable_mosaic.version = 11 : i64} {
  func.func @_concat_add_kernel(%arg0: i32, %arg1: i32, %arg2: memref<1x8x128xf32, #tpu.memory_space<vmem>>, %arg3: memref<1x8x128xf32, #tpu.memory_space<vmem>>, %arg4: memref<1x8x128xf32, #tpu.memory_space<vmem>>, %arg5: memref<1x8x128xf32, #tpu.memory_space<vmem>>, %arg6: memref<1x8x128xf32, #tpu.memory_space<vmem>>, %arg7: memref<1x8x128xf32, #tpu.memory_space<vmem>>, %arg8: memref<1x8x128xf32, #tpu.memory_space<vmem>>, %arg9: memref<1x8x128xf32, #tpu.memory_space<vmem>>, %arg10: memref<1x4x8x128xf32, #tpu.memory_space<vmem>>) attributes {dimension_semantics = [#tpu.dimension_semantics<parallel>, #tpu.dimension_semantics<parallel>], iteration_bounds = array<i64: 2, 1>, scalar_prefetch = 0 : i64, scratch_operands = 0 : i64, tpu.core_type = #tpu.core_type<tc>, window_params = [{transform_indices = @transform_0, window_bounds = array<i64: 1, 8, 128>}, {transform_indices = @transform_1, window_bounds = array<i64: 1, 8, 128>}, {transform_indices = @transform_2, window_bounds = array<i64: 1, 8, 128>}, {transform_indices = @transform_3, window_bounds = array<i64: 1, 8, 128>}, {transform_indices = @transform_4, window_bounds = array<i64: 1, 8, 128>}, {transform_indices = @transform_5, window_bounds = array<i64: 1, 8, 128>}, {transform_indices = @transform_6, window_bounds = array<i64: 1, 8, 128>}, {transform_indices = @transform_7, window_bounds = array<i64: 1, 8, 128>}, {transform_indices = @transform_8, window_bounds = array<i64: 1, 4, 8, 128>}]} {
    %c0 = arith.constant 0 : index
    %c0_0 = arith.constant 0 : index
    %c0_1 = arith.constant 0 : index
    %0 = vector.load %arg2[%c0, %c0_0, %c0_1] : memref<1x8x128xf32, #tpu.memory_space<vmem>>, vector<1x8x128xf32>
    %1 = vector.shape_cast %0 : vector<1x8x128xf32> to vector<8x128xf32>
    %c0_2 = arith.constant 0 : index
    %c0_3 = arith.constant 0 : index
    %c0_4 = arith.constant 0 : index
    %2 = vector.load %arg6[%c0_2, %c0_3, %c0_4] : memref<1x8x128xf32, #tpu.memory_space<vmem>>, vector<1x8x128xf32>
    %3 = vector.shape_cast %2 : vector<1x8x128xf32> to vector<8x128xf32>
    %4 = arith.addf %1, %3 : vector<8x128xf32>
    %c0_5 = arith.constant 0 : index
    %c0_6 = arith.constant 0 : index
    %c0_7 = arith.constant 0 : index
    %c0_8 = arith.constant 0 : index
    %5 = vector.load %arg10[%c0_5, %c0_6, %c0_7, %c0_8] : memref<1x4x8x128xf32, #tpu.memory_space<vmem>>, vector<1x1x8x128xf32>
    %6 = vector.shape_cast %5 : vector<1x1x8x128xf32> to vector<8x128xf32>
    %7 = vector.shape_cast %4 : vector<8x128xf32> to vector<1x1x8x128xf32>
    tpu.vector_store %arg10[%c0_5, %c0_6, %c0_7, %c0_8], %7 {strides = array<i32>} : memref<1x4x8x128xf32, #tpu.memory_space<vmem>>, vector<1x1x8x128xf32>,
    %c0_9 = arith.constant 0 : index
    %c0_10 = arith.constant 0 : index
    %c0_11 = arith.constant 0 : index
    %8 = vector.load %arg3[%c0_9, %c0_10, %c0_11] : memref<1x8x128xf32, #tpu.memory_space<vmem>>, vector<1x8x128xf32>
    %9 = vector.shape_cast %8 : vector<1x8x128xf32> to vector<8x128xf32>
    %c0_12 = arith.constant 0 : index
    %c0_13 = arith.constant 0 : index
    %c0_14 = arith.constant 0 : index
    %10 = vector.load %arg7[%c0_12, %c0_13, %c0_14] : memref<1x8x128xf32, #tpu.memory_space<vmem>>, vector<1x8x128xf32>
    %11 = vector.shape_cast %10 : vector<1x8x128xf32> to vector<8x128xf32>
    %12 = arith.addf %9, %11 : vector<8x128xf32>
    %c0_15 = arith.constant 0 : index
    %c1 = arith.constant 1 : index
    %c0_16 = arith.constant 0 : index
    %c0_17 = arith.constant 0 : index
    %13 = vector.load %arg10[%c0_15, %c1, %c0_16, %c0_17] : memref<1x4x8x128xf32, #tpu.memory_space<vmem>>, vector<1x1x8x128xf32>
    %14 = vector.shape_cast %13 : vector<1x1x8x128xf32> to vector<8x128xf32>
    %15 = vector.shape_cast %12 : vector<8x128xf32> to vector<1x1x8x128xf32>
    tpu.vector_store %arg10[%c0_15, %c1, %c0_16, %c0_17], %15 {strides = array<i32>} : memref<1x4x8x128xf32, #tpu.memory_space<vmem>>, vector<1x1x8x128xf32>,
    %c0_18 = arith.constant 0 : index
    %c0_19 = arith.constant 0 : index
    %c0_20 = arith.constant 0 : index
    %16 = vector.load %arg4[%c0_18, %c0_19, %c0_20] : memref<1x8x128xf32, #tpu.memory_space<vmem>>, vector<1x8x128xf32>
    %17 = vector.shape_cast %16 : vector<1x8x128xf32> to vector<8x128xf32>
    %c0_21 = arith.constant 0 : index
    %c0_22 = arith.constant 0 : index
    %c0_23 = arith.constant 0 : index
    %18 = vector.load %arg8[%c0_21, %c0_22, %c0_23] : memref<1x8x128xf32, #tpu.memory_space<vmem>>, vector<1x8x128xf32>
    %19 = vector.shape_cast %18 : vector<1x8x128xf32> to vector<8x128xf32>
    %20 = arith.addf %17, %19 : vector<8x128xf32>
    %c0_24 = arith.constant 0 : index
    %c2 = arith.constant 2 : index
    %c0_25 = arith.constant 0 : index
    %c0_26 = arith.constant 0 : index
    %21 = vector.load %arg10[%c0_24, %c2, %c0_25, %c0_26] : memref<1x4x8x128xf32, #tpu.memory_space<vmem>>, vector<1x1x8x128xf32>
    %22 = vector.shape_cast %21 : vector<1x1x8x128xf32> to vector<8x128xf32>
    %23 = vector.shape_cast %20 : vector<8x128xf32> to vector<1x1x8x128xf32>
    tpu.vector_store %arg10[%c0_24, %c2, %c0_25, %c0_26], %23 {strides = array<i32>} : memref<1x4x8x128xf32, #tpu.memory_space<vmem>>, vector<1x1x8x128xf32>,
    %c0_27 = arith.constant 0 : index
    %c0_28 = arith.constant 0 : index
    %c0_29 = arith.constant 0 : index
    %24 = vector.load %arg5[%c0_27, %c0_28, %c0_29] : memref<1x8x128xf32, #tpu.memory_space<vmem>>, vector<1x8x128xf32>
    %25 = vector.shape_cast %24 : vector<1x8x128xf32> to vector<8x128xf32>
    %c0_30 = arith.constant 0 : index
    %c0_31 = arith.constant 0 : index
    %c0_32 = arith.constant 0 : index
    %26 = vector.load %arg9[%c0_30, %c0_31, %c0_32] : memref<1x8x128xf32, #tpu.memory_space<vmem>>, vector<1x8x128xf32>
    %27 = vector.shape_cast %26 : vector<1x8x128xf32> to vector<8x128xf32>
    %28 = arith.addf %25, %27 : vector<8x128xf32>
    %c0_33 = arith.constant 0 : index
    %c3 = arith.constant 3 : index
    %c0_34 = arith.constant 0 : index
    %c0_35 = arith.constant 0 : index
    %29 = vector.load %arg10[%c0_33, %c3, %c0_34, %c0_35] : memref<1x4x8x128xf32, #tpu.memory_space<vmem>>, vector<1x1x8x128xf32>
    %30 = vector.shape_cast %29 : vector<1x1x8x128xf32> to vector<8x128xf32>
    %31 = vector.shape_cast %28 : vector<8x128xf32> to vector<1x1x8x128xf32>
    tpu.vector_store %arg10[%c0_33, %c3, %c0_34, %c0_35], %31 {strides = array<i32>} : memref<1x4x8x128xf32, #tpu.memory_space<vmem>>, vector<1x1x8x128xf32>,
    return
  }
  func.func @transform_0(%arg0: i32, %arg1: i32) -> (i32, i32, i32) {
    %c0_i32 = arith.constant 0 : i32
    %c0_i32_0 = arith.constant 0 : i32
    return %arg0, %arg1, %c0_i32 : i32, i32, i32
  }
  func.func @transform_1(%arg0: i32, %arg1: i32) -> (i32, i32, i32) {
    %c0_i32 = arith.constant 0 : i32
    %c0_i32_0 = arith.constant 0 : i32
    return %arg0, %arg1, %c0_i32 : i32, i32, i32
  }
  func.func @transform_2(%arg0: i32, %arg1: i32) -> (i32, i32, i32) {
    %c0_i32 = arith.constant 0 : i32
    %c0_i32_0 = arith.constant 0 : i32
    return %arg0, %arg1, %c0_i32 : i32, i32, i32
  }
  func.func @transform_3(%arg0: i32, %arg1: i32) -> (i32, i32, i32) {
    %c0_i32 = arith.constant 0 : i32
    %c0_i32_0 = arith.constant 0 : i32
    return %arg0, %arg1, %c0_i32 : i32, i32, i32
  }
  func.func @transform_4(%arg0: i32, %arg1: i32) -> (i32, i32, i32) {
    %c0_i32 = arith.constant 0 : i32
    %c0_i32_0 = arith.constant 0 : i32
    return %arg0, %arg1, %c0_i32 : i32, i32, i32
  }
  func.func @transform_5(%arg0: i32, %arg1: i32) -> (i32, i32, i32) {
    %c0_i32 = arith.constant 0 : i32
    %c0_i32_0 = arith.constant 0 : i32
    return %arg0, %arg1, %c0_i32 : i32, i32, i32
  }
  func.func @transform_6(%arg0: i32, %arg1: i32) -> (i32, i32, i32) {
    %c0_i32 = arith.constant 0 : i32
    %c0_i32_0 = arith.constant 0 : i32
    return %arg0, %arg1, %c0_i32 : i32, i32, i32
  }
  func.func @transform_7(%arg0: i32, %arg1: i32) -> (i32, i32, i32) {
    %c0_i32 = arith.constant 0 : i32
    %c0_i32_0 = arith.constant 0 : i32
    return %arg0, %arg1, %c0_i32 : i32, i32, i32
  }
  func.func @transform_8(%arg0: i32, %arg1: i32) -> (i32, i32, i32, i32) {
    %c0_i32 = arith.constant 0 : i32
    %c0_i32_0 = arith.constant 0 : i32
    %c0_i32_1 = arith.constant 0 : i32
    return %arg0, %c0_i32, %arg1, %c0_i32_0 : i32, i32, i32, i32
  }
}

</mosaic_0001>

<bundles_post_ra>
// kernel: tpu_custom_call.1
= control target key start
LH: loop header
LB: loop body
LE: loop exit
PB: predicated region body
PF: predicated region fallthrough
CT: control target
= control target key end

     0   :  { %s1672_s0 = inlined_call_operand.hbm [shape: f32[2,8,128], index: 0, kind: input, shape index: {}]   ;;  %s1673_s1 = inlined_call_operand.hbm [shape: f32[2,8,128], index: 1, kind: input, shape index: {}]   ;;  %s1674_s2 = inlined_call_operand.hbm [shape: f32[2,8,128], index: 2, kind: input, shape index: {}]   ;;  %s1675_s3 = inlined_call_operand.hbm [shape: f32[2,8,128], index: 3, kind: input, shape index: {}]   ;;  %s1676_s4 = inlined_call_operand.hbm [shape: f32[2,8,128], index: 4, kind: input, shape index: {}]   ;;  %s1677_s5 = inlined_call_operand.hbm [shape: f32[2,8,128], index: 5, kind: input, shape index: {}]   ;;  %s1678_s6 = inlined_call_operand.hbm [shape: f32[2,8,128], index: 6, kind: input, shape index: {}]   ;;  %s1679_s7 = inlined_call_operand.hbm [shape: f32[2,8,128], index: 7, kind: input, shape index: {}]   ;;  %s1680_s8 = inlined_call_operand.hbm [shape: f32[2,4,8,128], index: 8, kind: output, shape index: {}]  }
   0x1   :  { %1690 = sst [smem:[#allocation29_spill]] %s1672_s0 }
   0x2   :  { %1691 = sst [smem:[#allocation30_spill]] %s1673_s1 }
   0x3   :  { %1692 = sst [smem:[#allocation31_spill]] %s1674_s2 }
   0x4   :  { %1693 = sst [smem:[#allocation32_spill]] %s1675_s3 }
   0x5   :  { %1694 = sst [smem:[#allocation33_spill]] %s1676_s4 }
   0x6   :  { %1695 = sst [smem:[#allocation34_spill]] %s1677_s5 }
   0x7   :  { %13 = vsyncpa [#allocation3], 0 }
   0x8   :  { %15 = vsyncpa [#allocation3 + $0x1], 0 }
   0x9   :  { %16 = vsyncpa [#allocation6], 0 }
   0xa   :  { %18 = vsyncpa [#allocation6 + $0x1], 0 }
   0xb   :  { %19 = vsyncpa [#allocation9], 0 }
   0xc   :  { %21 = vsyncpa [#allocation9 + $0x1], 0 }
   0xd   :  { %22 = vsyncpa [#allocation12], 0 }
   0xe   :  { %24 = vsyncpa [#allocation12 + $0x1], 0 }
   0xf   :  { %25 = vsyncpa [#allocation15], 0 }
  0x10   :  { %27 = vsyncpa [#allocation15 + $0x1], 0 }
  0x11   :  { %28 = vsyncpa [#allocation4], 0 }
  0x12   :  { %30 = vsyncpa [#allocation4 + $0x1], 0  ;;  %s1429_s27 = smov 0   ;;  %s1431_s28 = smov 0  }
  0x13   :  { %s1433_s29 = smov 0   ;;  %s1435_s30 = smov 0  }
  0x14   :  { %s1437_s9 = smov 0   ;;  %s1439_s10 = smov 0  }
  0x15 LB: > { %1696 = sst [smem:[#allocation23_spill]] %s1368_s29  ;;  %s1460_s11 = sadd.s32 4294967295, %s1380_s10   ;;  %s1380_s10 = sphi %s1439_s10, %s36_s10   ;;  %s1376_s9 = sphi %s1437_s9, %s1722_s9   ;;  %s1372_s30 = sphi %s1435_s30, %s1721_s30   ;;  %s1368_s29 = sphi %s1433_s29, %s1720_s29   ;;  %s1364_s28 = sphi %s1431_s28, %s1724_s28   ;;  %s1360_s27 = sphi %s1429_s27, %s1723_s27  }
  0x16   : > { %1697 = sst [smem:[#allocation24_spill]] %s1376_s9  ;;  %s905_s12 = sadd.s32 4294967294, %s1380_s10  }
  0x17   : > { %1698 = sst [smem:[#allocation25_spill]] %s1380_s10  ;;  %s48_s13 = sadd.s32 1, %s1376_s9 }
  0x18   : > { %s57_s14 = sadd.s32 1, %s1368_s29  ;;  %p50_p0 = scmp.ge.s32.totalorder %s48_s13, 2 }
  0x19   : > { %p64_p1 = scmp.ne.s32.totalorder %s1368_s29, %s1364_s28  ;;  %p65_p2 = scmp.eq.s32.totalorder %s1380_s10, 0 }
  0x1a   : > { %p70_p3 = scmp.ne.s32.totalorder %s1364_s28, %s1360_s27  ;;  %s1726_s13 = smov (%p50_p0, %s48_s13), 0 }
  0x1b   : > { %1699 = sst [smem:[#allocation26_spill]] %s1726_s13  ;;  %p1472_p4 = por %p65_p2, %p64_p1 }
  0x1c   : > { %p71_p5 = scmp.eq.s32.totalorder %s1460_s11, 0  ;;  %s52_s16 = ssub.s32 %s1376_s9, %s1726_s13 }
  0x1d   : > { %p292_p6 = scmp.eq.s32.totalorder %s1460_s11, 1  ;;  %p55_p7 = scmp.eq.s32.totalorder %s52_s16, 0 }
  0x1e   : > { %p1480_p8 = por %p71_p5, %p70_p3  ;;  %p298_p10 = scmp.eq.s32.totalorder %s905_s12, 1 }
  0x1f   : > { %p1484_p9 = por %p292_p6, %p64_p1  ;;  %p907_p12 = scmp.ge.s32.totalorder %s1380_s10, 2 }
  0x20   : > { %s1489_s19 = scalar_select %p55_p7, %s1368_s29, %s57_s14  }
  0x21   : > { %p1491_p11 = por %p298_p10, %p70_p3  ;;  %p990_p13 = scmp.lt.s32.totalorder %s1380_s10, 2 }
  0x22   : > { %1703 = sst [smem:[#allocation27_spill]] %s1489_s19  ;;  %s1498_s21 = sand.u32 1, %s1368_s29  }
  0x23   : > { %s1704_s20 = scalar_select %p1491_p11, 1, 0 }
  0x24   : > { %s1501_s22 = sshll.u32 %s1498_s21, 3  ;;  %s1504_s23 = sshll.u32 %s1376_s9, 3 }
  0x25   : > { %1705 = sst [smem:[#allocation28_spill]] %s1704_s20  ;;  %p1508_p0 = pnand %p990_p13, %p1472_p4 }
  0x26   : > { %s1513_s25 = sand.u32 1, %s1380_s10   ;;  %s1707_s1 = sld [smem:[#allocation30_spill]] }
  0x27   : > { %s342_s13 = scalar_lea.vmem [#allocation5], %s1501_s22  ;;  %s1684_s9 = scalar_lea.sflag [#allocation6], %s1513_s25 }
  0x28   : > { %s351_s15 = sshll.u32 %s342_s13, 4  ;;  %p924_p1 = scmp.ge.s32.totalorder %s1380_s10, 1  ;;  %s352_s15 = int_to_ptr.vmem [resolvable:$true] %s351_s15 }
  0x29   : > { %p476_p2 = scmp.lt.s32.totalorder %s1380_s10, 3  ;;  %s1709_s3 = sld [smem:[#allocation32_spill]] }
  0x2a   : > { %s382_s19 = scalar_lea.vmem [#allocation8], %s1501_s22  ;;  %s1710_s5 = sld [smem:[#allocation34_spill]] }
  0x2b   : > { %p1527_p3 = pnand %p924_p1, %p476_p2  ;;  %s391_s29 = sshll.u32 %s382_s19, 4  ;;  %s392_s29 = int_to_ptr.vmem [resolvable:$true] %s391_s29 }
  0x2c   : > { %s347_s14 = scalar_lea.hbm %s1707_s1, %s1504_s23  ;;  %s1688_s19 = scalar_lea.sflag [#allocation12], %s1513_s25 }
  0x2d   : > { %s349_s16 = sshll.u32 %s347_s14, 4  ;;  %s422_s14 = scalar_lea.vmem [#allocation11], %s1501_s22  ;;  %s350_s16 = int_to_ptr.hbm [resolvable:$true] %s349_s16 }
  0x2e   : > { %967 = dma.hbm_to_vmem [thread:$0]  (!%p1508_p0), %s350_s16, 128, %s352_s15, %s1684_s9  }
  0x2f   : > { %s387_s13 = scalar_lea.hbm %s1709_s3, %s1504_s23  ;;  %s1687_s16 = scalar_lea.sflag [#allocation9], %s1513_s25 }
  0x30   : > { %s389_s1 = sshll.u32 %s387_s13, 4  ;;  %s427_s12 = scalar_lea.hbm %s1710_s5, %s1504_s23  ;;  %s390_s1 = int_to_ptr.hbm [resolvable:$true] %s389_s1 }
  0x31   : > { %973 = dma.hbm_to_vmem [thread:$0]  (!%p1508_p0), %s390_s1, 128, %s392_s29, %s1687_s16  }
  0x32   : > { %s431_s3 = sshll.u32 %s422_s14, 4  ;;  %s429_s13 = sshll.u32 %s427_s12, 4  ;;  %s432_s3 = int_to_ptr.vmem [resolvable:$true] %s431_s3  ;;  %s430_s13 = int_to_ptr.hbm [resolvable:$true] %s429_s13 }
  0x33   : > { %979 = dma.hbm_to_vmem [thread:$0]  (!%p1508_p0), %s430_s13, 128, %s432_s3, %s1688_s19  }
  0x34   : > { %s1711_s0 = sld [smem:[#allocation29_spill]]  ;;  %s322_s15 = scalar_lea.vmem [#allocation2], %s1501_s22 }
  0x35   : > { %s331_s16 = sshll.u32 %s322_s15, 4  ;;  %s319_s12 = scalar_lea.sflag [#allocation3], %s1498_s21  ;;  %s332_s16 = int_to_ptr.vmem [resolvable:$true] %s331_s16 }
  0x36   : > { %s1712_s2 = sld [smem:[#allocation31_spill]]  ;;  %s362_s13 = scalar_lea.vmem [#allocation7], %s1501_s22 }
  0x37   : > { %s371_s1 = sshll.u32 %s362_s13, 4  ;;  %s1714_s4 = sld [smem:[#allocation33_spill]]  ;;  %s372_s1 = int_to_ptr.vmem [resolvable:$true] %s371_s1 }
  0x38   : > { %s402_s5 = scalar_lea.vmem [#allocation10], %s1501_s22  ;;  %s1715_s14 = scalar_lea.sflag [#allocation9], %s1513_s25 }
  0x39   : > { %s1716_s19 = scalar_lea.sflag [#allocation12], %s1513_s25 }
  0x3a   : > { %s327_s29 = scalar_lea.hbm %s1711_s0, %s1504_s23  ;;  %s447_s0 = scalar_lea.hbm %s1678_s6, %s1504_s23 }
  0x3b   : > { %s329_s9 = sshll.u32 %s327_s29, 4  ;;  %s1713_s29 = scalar_lea.sflag [#allocation6], %s1513_s25  ;;  %s330_s9 = int_to_ptr.hbm [resolvable:$true] %s329_s9 }
  0x3c   : > { %964 = dma.hbm_to_vmem [thread:$0]  (!%p1508_p0), %s330_s9, 128, %s332_s16, %s319_s12  }
  0x3d   : > { %s367_s3 = scalar_lea.hbm %s1712_s2, %s1504_s23  ;;  %s407_s16 = scalar_lea.hbm %s1714_s4, %s1504_s23 }
  0x3e   : > { %s369_s10 = sshll.u32 %s367_s3, 4  ;;  %s409_s9 = sshll.u32 %s407_s16, 4  ;;  %s370_s10 = int_to_ptr.hbm [resolvable:$true] %s369_s10  ;;  %s410_s9 = int_to_ptr.hbm [resolvable:$true] %s409_s9 }
  0x3f   : > { %970 = dma.hbm_to_vmem [thread:$0]  (!%p1508_p0), %s370_s10, 128, %s372_s1, %s1713_s29  }
  0x40   : > { %s411_s12 = sshll.u32 %s402_s5, 4  ;;  %s449_s10 = sshll.u32 %s447_s0, 4  ;;  %s412_s12 = int_to_ptr.vmem [resolvable:$true] %s411_s12  ;;  %s450_s10 = int_to_ptr.hbm [resolvable:$true] %s449_s10 }
  0x41   : > { %976 = dma.hbm_to_vmem [thread:$0]  (!%p1508_p0), %s410_s9, 128, %s412_s12, %s1715_s14  }
  0x42   : > { %s442_s1 = scalar_lea.vmem [#allocation13], %s1501_s22  ;;  %s467_s5 = scalar_lea.hbm %s1679_s7, %s1504_s23 }
  0x43   : > { %s451_s29 = sshll.u32 %s442_s1, 4  ;;  %s462_s2 = scalar_lea.vmem [#allocation14], %s1501_s22  ;;  %s452_s29 = int_to_ptr.vmem [resolvable:$true] %s451_s29 }
  0x44   : > { %982 = dma.hbm_to_vmem [thread:$0]  (!%p1508_p0), %s450_s10, 128, %s452_s29, %s1716_s19  }
  0x45   : > { %s471_s4 = sshll.u32 %s462_s2, 4  ;;  %s469_s20 = sshll.u32 %s467_s5, 4  ;;  %s472_s4 = int_to_ptr.vmem [resolvable:$true] %s471_s4  ;;  %s470_s20 = int_to_ptr.hbm [resolvable:$true] %s469_s20 }
  0x46   : > { %s459_s9 = scalar_lea.sflag [#allocation15], %s1498_s21  ;;  %480 = sbr.rel (%p1527_p3) target bundleno = 104 (0x68), region = 52 }
  0x47   : > { %985 = dma.hbm_to_vmem [thread:$0]  (!%p1508_p0), %s470_s20, 128, %s472_s4, %s459_s9  }
  0x48   : > { %s1597_s0 = sand.u32 (!%p1527_p3), 1, %s1364_s28  }
  0x49   : > { %s1600_s25 = sshll.u32 (!%p1527_p3), %s1597_s0, 3  ;;  %s483_s22 = scalar_lea.sflag (!%p1527_p3), [#allocation3], %s1597_s0 }
  0x4a   : > { %s486_s2 = scalar_lea.vmem (!%p1527_p3), [#allocation2], %s1600_s25 }
  0x4b   : > { %1335 = dma.done.wait (%p1480_p8), %s483_s22, 128  }
  0x4c   : > { %1337 = vsyncadd (%p1480_p8), %s483_s22, 4294967168  ;;  %s492_s4 = sand.u32 1, %s1460_s11   ;;  %s496_s21 = scalar_lea.vmem [#allocation5], %s1600_s25 }
  0x4d   : > { %s493_s20 = scalar_lea.sflag [#allocation6], %s492_s4 }
  0x4e   : > { %1339 = dma.done.wait (%p1480_p8), %s493_s20, 256  }
  0x4f   : > { %1341 = vsyncadd (%p1480_p8), %s493_s20, 4294967040  ;;  %s506_s23 = scalar_lea.vmem [#allocation7], %s1600_s25  ;;  %s513_s24 = scalar_lea.sflag [#allocation9], %s492_s4 }
  0x50   : > { %s516_s26 = scalar_lea.vmem [#allocation8], %s1600_s25 }
  0x51   : > { %1343 = dma.done.wait (%p1480_p8), %s513_s24, 256  }
  0x52   : > { %1345 = vsyncadd (%p1480_p8), %s513_s24, 4294967040  ;;  %s526_s11 = scalar_lea.vmem [#allocation10], %s1600_s25  ;;  %s533_s12 = scalar_lea.sflag [#allocation12], %s492_s4 }
  0x53   : > { %s536_s14 = scalar_lea.vmem [#allocation11], %s1600_s25 }
  0x54   : > { %1347 = dma.done.wait (%p1480_p8), %s533_s12, 256  }
  0x55   : > { %1349 = vsyncadd (%p1480_p8), %s533_s12, 4294967040  ;;  %s546_s3 = scalar_lea.vmem [#allocation13], %s1600_s25  ;;  %s553_s13 = scalar_lea.sflag [#allocation15], %s1597_s0 }
  0x56   : > { %s556_s10 = scalar_lea.vmem [#allocation14], %s1600_s25 }
  0x57   : > { %1351 = dma.done.wait (%p1480_p8), %s553_s13, 128  }
  0x58   : > { %1353 = vsyncadd (%p1480_p8), %s553_s13, 4294967168  ;;  %s933_s1 = sshll.u32 %s1597_s0, 5  ;;  %s942_s29 = sshll.u32 %s1372_s30, 5  ;;  %v625_v0 = vld [vmem:[%s486_s2] sm:$0xff]  ;;  %v629_v2 = vld [vmem:[%s496_s21] sm:$0xff] }
  0x59   : > { %s657_s16 = scalar_lea.hbm %s1680_s8, %s942_s29  ;;  %v626_v1 = vld [vmem:[%s526_s11] sm:$0xff]  ;;  %s624_s5 = scalar_lea.vmem [#allocation16], %s933_s1  ;;  %v630_v4 = vld [vmem:[%s536_s14] sm:$0xff] }
  0x5a   : > { %s658_s9 = sshll.u32 %s624_s5, 4  ;;  %s660_s22 = sshll.u32 %s657_s16, 4  ;;  %v627_v3 = vadd.f32 %v626_v1, %v625_v0  ;;  %v634_v5 = vld [vmem:[%s506_s23] sm:$0xff]  ;;  %v631_v7 = vadd.f32 %v630_v4, %v629_v2  ;;  %v639_v9 = vld [vmem:[%s516_s26] sm:$0xff]  ;;  %s659_s9 = int_to_ptr.vmem [resolvable:$true] %s658_s9  ;;  %s661_s22 = int_to_ptr.hbm [resolvable:$true] %s660_s22 }
  0x5b   : > { %v635_v6 = vld [vmem:[%s546_s3] sm:$0xff]  ;;  %v640_v10 = vld [vmem:[%s556_s10] sm:$0xff]  ;;  %s645_s30 = scalar_lea.sflag [#allocation4], %s1597_s0  ;;  %s1296_s17 = sshra.s32 %s661_s22, 4  ;;  %s1297_s17 = int_to_ptr.hbm [resolvable:$true] %s1296_s17 }
  0x5c   : > { %v636_v8 = vadd.f32 %v635_v6, %v634_v5  ;;  %628 = vst [vmem:[%s624_s5] sm:$0xff] %v627_v3  ;;  %v641_v11 = vadd.f32 %v640_v10, %v639_v9  ;;  %s1298_s25 = scalar_lea.hbm %s1297_s17, 32  ;;  %s1302_s20 = scalar_lea.hbm %s1680_s8, 64 }
  0x5d   : > { %934 = vst [vmem:[%s624_s5 + $0x8] sm:$0xff] %v631_v7  ;;  %p1299_p4 = scmp.ne.s32.totalorder %s1297_s17, %s1298_s25  ;;  %p1303_p7 = scmp.lt.s32.totalorder %s1297_s17, %s1680_s8 }
  0x5e   : > { %935 = vst [vmem:[%s624_s5 + $0x10] sm:$0xff] %v636_v8  ;;  %p1304_p8 = scmp.lt.s32.totalorder %s1302_s20, %s1298_s25 }
  0x5f   : > { %936 = vst [vmem:[%s624_s5 + $0x18] sm:$0xff] %v641_v11  ;;  %p1300_p5 = pnand %p1299_p4, %p1484_p9 }
  0x60   : > { %p1305_p10 = por %p1304_p8, %p1303_p7 }
  0x61   : > { %p1301_p6 = pneg %p1300_p5 }
  0x63   : > { %p1306_p13 = pnand %p1305_p10, %p1301_p6 }
  0x65   : > { %1309 = shalt.err (!%p1306_p13)
}
  0x66   : > { %s1382_s0 = smov 128   ;;  %s1383_s24 = smov 8  }
  0x67   : > { %959 = dma.vmem_to_hbm [thread:$0]  (%p1484_p9), %s659_s9, 512, %s661_s22, %s645_s30, %s1382_s0, %s1382_s0, %s1383_s24  }
  0x68 PF: > { %s1718_s11 = sld [smem:[#allocation25_spill]]  ;;  %s675_s12 = sand.u32 1, %s1360_s27  }
  0x69   : > { %p987_p0 = pnand %p907_p12, %p1491_p11  ;;  %s676_s14 = scalar_lea.sflag [#allocation4], %s675_s12 }
  0x6b   : > { %p988_p1 = pneg %p987_p0 }
  0x6d   : > { %1355 = dma.done.wait (%p988_p1), %s676_s14, 512  }
  0x6e   : > { %1357 = vsyncadd (%p988_p1), %s676_s14, 4294966784  ;;  %s36_s10 = sadd.s32 1, %s1718_s11   ;;  %s1719_s3 = sld [smem:[#allocation23_spill]] }
  0x6f   : > { %p33_p2 = scmp.ge.s32.totalorder %s36_s10, 4   ;;  %s1720_s29 = sld [smem:[#allocation27_spill]] }
  0x70   : > { %s1721_s30 = sld [smem:[#allocation24_spill]]  ;;  %s1723_s27 = smov %s1364_s28 }
  0x71   : > { %s1722_s9 = sld [smem:[#allocation26_spill]]  ;;  %35 = sbr.rel (!%p33_p2) target bundleno = 21 (0x15), region = 185 }
  0x74   : > { %s1724_s28 = smov %s1719_s3 }
  0x76   :  { %682 = vsyncpa [#allocation3], 1 }
  0x77   :  { %684 = vsyncpa [#allocation3 + $0x1], 1 }
  0x78   :  { %685 = vsyncpa [#allocation6], 1 }
  0x79   :  { %687 = vsyncpa [#allocation6 + $0x1], 1 }
  0x7a   :  { %688 = vsyncpa [#allocation9], 1 }
  0x7b   :  { %690 = vsyncpa [#allocation9 + $0x1], 1 }
  0x7c   :  { %691 = vsyncpa [#allocation12], 1 }
  0x7d   :  { %693 = vsyncpa [#allocation12 + $0x1], 1 }
  0x7e   :  { %694 = vsyncpa [#allocation15], 1 }
  0x7f   :  { %696 = vsyncpa [#allocation15 + $0x1], 1 }
  0x80   :  { %697 = vsyncpa [#allocation4], 1 }
  0x81   :  { %699 = vsyncpa [#allocation4 + $0x1], 1 }

</bundles_post_ra>
